<compile_context>
chip_gen: v7x
topology: tpu7x:2x2x1
jax: 0.10.0
libtpu: 0.0.40
codegen_flags: <defaults>
</compile_context>

<pallas_src>
import functools

import jax
import jax.numpy as jnp
from jax.experimental import pallas as pl
from jax.experimental.pallas import tpu as pltpu


LANE = 128  # TPU lane width; feature dims are padded to this for lane density.


# ---------------------------------------------------------------------------
# Fused kernel: pre -> [Linear + ReLU] * n_ms -> post, weights VMEM-resident.
# ---------------------------------------------------------------------------
def _fused_mlp_kernel(x_ref, pre_w_ref, pre_b_ref, ms_w_ref, ms_b_ref,
                      post_w_ref, post_b_ref, out_ref, hid_ref=None,
                      *, n_ms, collect_hidden):
    # pre: x @ W_pre + b_pre   (MXU matmul, f32 accumulation)
    y = jnp.dot(x_ref[...], pre_w_ref[...], preferred_element_type=jnp.float32)
    y = y + pre_b_ref[...]                      # (1, D) bias broadcasts over rows

    # ms chain, statically unrolled (n_ms is small and known at trace time).
    for i in range(n_ms):
        if collect_hidden:
            hid_ref[i] = y.astype(hid_ref.dtype)   # hidden state fed to ms[i]
        y = jnp.dot(y, ms_w_ref[i], preferred_element_type=jnp.float32)
        y = jnp.maximum(y + ms_b_ref[i], 0.0)

    # post: y @ W_post + b_post
    out = jnp.dot(y, post_w_ref[...], preferred_element_type=jnp.float32)
    out_ref[...] = (out + post_b_ref[...]).astype(out_ref.dtype)


# ---------------------------------------------------------------------------
# Wrapper: one pallas_call for the whole forward pass.
# ---------------------------------------------------------------------------
def model_normal_forward(kparams, x, *, d_hid, d_out, return_hidden_states=False):
    """Mirrors Model_NORMAL.forward. `kparams` are the packed/padded params."""
    n_ms = kparams["ms_w"].shape[0]
    B = x.shape[0]
    d_hid_pad = kparams["pre_w"].shape[1]
    d_out_pad = kparams["post_w"].shape[1]

    kernel = functools.partial(_fused_mlp_kernel, n_ms=n_ms,
                               collect_hidden=return_hidden_states)
    vmem = pl.BlockSpec(memory_space=pltpu.MemorySpace.VMEM)

    if return_hidden_states:
        out_shape = (jax.ShapeDtypeStruct((B, d_out_pad), x.dtype),
                     jax.ShapeDtypeStruct((n_ms, B, d_hid_pad), x.dtype))
        out_specs = (vmem, vmem)
    else:
        out_shape = jax.ShapeDtypeStruct((B, d_out_pad), x.dtype)
        out_specs = vmem

    result = pl.pallas_call(
        kernel,
        out_shape=out_shape,
        in_specs=[vmem] * 7,
        out_specs=out_specs,
    )(x, kparams["pre_w"], kparams["pre_b"], kparams["ms_w"], kparams["ms_b"],
      kparams["post_w"], kparams["post_b"])

    if return_hidden_states:
        out, hid = result
        hidden = [hid[i, :, :d_hid] for i in range(n_ms)]  # list, like PyTorch `o`
        return out[:, :d_out], hidden
    return result[:, :d_out]


# ---------------------------------------------------------------------------
# Parameter construction.
# ---------------------------------------------------------------------------
def init_params(key, d_in, d_hid, d_out, n_ms):
    """Deterministic logical (unpadded) parameters matching the module shapes."""
    keys = jax.random.split(key, 2 * (n_ms + 2))
    return {
        "pre_w": jax.random.normal(keys[0], (d_in, d_hid), jnp.float32) * 0.05,
        "pre_b": jax.random.normal(keys[1], (d_hid,), jnp.float32) * 0.05,
        "ms_w": [jax.random.normal(keys[2 + 2 * i], (d_hid, d_hid), jnp.float32) * 0.05
                 for i in range(n_ms)],
        "ms_b": [jax.random.normal(keys[3 + 2 * i], (d_hid,), jnp.float32) * 0.05
                 for i in range(n_ms)],
        "post_w": jax.random.normal(keys[-2], (d_hid, d_out), jnp.float32) * 0.05,
        "post_b": jax.random.normal(keys[-1], (d_out,), jnp.float32) * 0.05,
    }


def pack_params(params, *, lane=LANE):
    """Pad feature dims up to the 128-lane width (zeros) and stack the ms layers.

    Zero padding is exact: padded output columns get 0 contribution + 0 bias,
    ReLU(0) = 0, and downstream padded weight rows are 0, so the valid columns
    are identical to the unpadded computation. Done once at init.
    """
    d_hid = params["pre_w"].shape[1]
    d_out = params["post_w"].shape[1]
    d_hid_pad = ((d_hid + lane - 1) // lane) * lane
    d_out_pad = ((d_out + lane - 1) // lane) * lane

    pre_w = jnp.pad(params["pre_w"], ((0, 0), (0, d_hid_pad - d_hid)))
    pre_b = jnp.pad(params["pre_b"], (0, d_hid_pad - d_hid)).reshape(1, d_hid_pad)

    ms_w = jnp.stack([jnp.pad(w, ((0, d_hid_pad - d_hid), (0, d_hid_pad - d_hid)))
                      for w in params["ms_w"]])
    ms_b = jnp.stack([jnp.pad(b, (0, d_hid_pad - d_hid)).reshape(1, d_hid_pad)
                      for b in params["ms_b"]])

    post_w = jnp.pad(params["post_w"],
                     ((0, d_hid_pad - d_hid), (0, d_out_pad - d_out)))
    post_b = jnp.pad(params["post_b"], (0, d_out_pad - d_out)).reshape(1, d_out_pad)

    return {"pre_w": pre_w, "pre_b": pre_b, "ms_w": ms_w, "ms_b": ms_b,
            "post_w": post_w, "post_b": post_b}


if __name__ == "__main__":
    B, D_IN, D_HID, D_OUT, N_MS = 8, 32, 32, 16, 3

    key = jax.random.PRNGKey(0)
    k_x, k_p = jax.random.split(key)
    x = jax.random.normal(k_x, (B, D_IN), jnp.float32)
    params = init_params(k_p, D_IN, D_HID, D_OUT, N_MS)
    kparams = pack_params(params)

    # Default path (return_hidden_states=False) — single fused kernel launch.
    fwd = jax.jit(functools.partial(model_normal_forward, d_hid=D_HID, d_out=D_OUT))
    out = jax.block_until_ready(fwd(kparams, x))

    # Pure-JAX reference of the same chain (unpadded params).
    ref = x @ params["pre_w"] + params["pre_b"]
    hid_ref = []
    for w, b in zip(params["ms_w"], params["ms_b"]):
        hid_ref.append(ref)
        ref = jnp.maximum(ref @ w + b, 0.0)
    ref_out = ref @ params["post_w"] + params["post_b"]

    assert out.shape == (B, D_OUT)
    assert jnp.allclose(out, ref_out, atol=1e-5, rtol=1e-5)

    # Hidden-state path (return_hidden_states=True) parity check.
    out2, hidden = model_normal_forward(kparams, x, d_hid=D_HID, d_out=D_OUT,
                                        return_hidden_states=True)
    out2 = jax.block_until_ready(out2)
    assert jnp.allclose(out2, ref_out, atol=1e-5, rtol=1e-5)
    assert len(hidden) == N_MS
    for h, hr in zip(hidden, hid_ref):
        assert h.shape == (B, D_HID)
        assert jnp.allclose(h, hr, atol=1e-5, rtol=1e-5)

    print("KERNEL_OK")
</pallas_src>

<mosaic_0001>
module attributes {stable_mosaic.version = 11 : i64} {
  func.func @_fused_mlp_kernel(%arg0: memref<8x32xf32, #tpu.memory_space<vmem>>, %arg1: memref<32x128xf32, #tpu.memory_space<vmem>>, %arg2: memref<1x128xf32, #tpu.memory_space<vmem>>, %arg3: memref<3x128x128xf32, #tpu.memory_space<vmem>>, %arg4: memref<3x1x128xf32, #tpu.memory_space<vmem>>, %arg5: memref<128x128xf32, #tpu.memory_space<vmem>>, %arg6: memref<1x128xf32, #tpu.memory_space<vmem>>, %arg7: memref<8x128xf32, #tpu.memory_space<vmem>>) attributes {dimension_semantics = [], scalar_prefetch = 0 : i64, scratch_operands = 0 : i64, tpu.core_type = #tpu.core_type<tc>} {
    %c0 = arith.constant 0 : index
    %c0_0 = arith.constant 0 : index
    %0 = vector.load %arg0[%c0, %c0_0] : memref<8x32xf32, #tpu.memory_space<vmem>>, vector<8x32xf32>
    %c0_1 = arith.constant 0 : index
    %c0_2 = arith.constant 0 : index
    %1 = vector.load %arg1[%c0_1, %c0_2] : memref<32x128xf32, #tpu.memory_space<vmem>>, vector<32x128xf32>
    %cst = arith.constant dense<0.000000e+00> : vector<8x128xf32>
    %2 = tpu.matmul %0, %1, %cst {dimension_numbers = #tpu.dot_dimension_numbers<[1], [0], [0], [1], [0, 0, 1, 1], [], []>} : vector<8x32xf32>, vector<32x128xf32>, vector<8x128xf32> -> vector<8x128xf32>
    %c0_3 = arith.constant 0 : index
    %c0_4 = arith.constant 0 : index
    %3 = vector.load %arg2[%c0_3, %c0_4] : memref<1x128xf32, #tpu.memory_space<vmem>>, vector<1x128xf32>
    %4 = vector.broadcast %3 : vector<1x128xf32> to vector<8x128xf32>
    %5 = arith.addf %2, %4 : vector<8x128xf32>
    %c0_5 = arith.constant 0 : index
    %c0_6 = arith.constant 0 : index
    %c0_7 = arith.constant 0 : index
    %6 = vector.load %arg3[%c0_5, %c0_6, %c0_7] : memref<3x128x128xf32, #tpu.memory_space<vmem>>, vector<1x128x128xf32>
    %7 = vector.shape_cast %6 : vector<1x128x128xf32> to vector<128x128xf32>
    %cst_8 = arith.constant dense<0.000000e+00> : vector<8x128xf32>
    %8 = tpu.matmul %5, %7, %cst_8 {dimension_numbers = #tpu.dot_dimension_numbers<[1], [0], [0], [1], [0, 0, 1, 1], [], []>} : vector<8x128xf32>, vector<128x128xf32>, vector<8x128xf32> -> vector<8x128xf32>
    %c0_9 = arith.constant 0 : index
    %c0_10 = arith.constant 0 : index
    %c0_11 = arith.constant 0 : index
    %9 = vector.load %arg4[%c0_9, %c0_10, %c0_11] : memref<3x1x128xf32, #tpu.memory_space<vmem>>, vector<1x1x128xf32>
    %10 = vector.shape_cast %9 : vector<1x1x128xf32> to vector<1x128xf32>
    %11 = vector.broadcast %10 : vector<1x128xf32> to vector<8x128xf32>
    %12 = arith.addf %8, %11 : vector<8x128xf32>
    %cst_12 = arith.constant 0.000000e+00 : f32
    %13 = vector.broadcast %cst_12 : f32 to vector<8x128xf32>
    %14 = arith.maximumf %12, %13 : vector<8x128xf32>
    %c1 = arith.constant 1 : index
    %c0_13 = arith.constant 0 : index
    %c0_14 = arith.constant 0 : index
    %15 = vector.load %arg3[%c1, %c0_13, %c0_14] : memref<3x128x128xf32, #tpu.memory_space<vmem>>, vector<1x128x128xf32>
    %16 = vector.shape_cast %15 : vector<1x128x128xf32> to vector<128x128xf32>
    %cst_15 = arith.constant dense<0.000000e+00> : vector<8x128xf32>
    %17 = tpu.matmul %14, %16, %cst_15 {dimension_numbers = #tpu.dot_dimension_numbers<[1], [0], [0], [1], [0, 0, 1, 1], [], []>} : vector<8x128xf32>, vector<128x128xf32>, vector<8x128xf32> -> vector<8x128xf32>
    %c1_16 = arith.constant 1 : index
    %c0_17 = arith.constant 0 : index
    %c0_18 = arith.constant 0 : index
    %18 = vector.load %arg4[%c1_16, %c0_17, %c0_18] : memref<3x1x128xf32, #tpu.memory_space<vmem>>, vector<1x1x128xf32>
    %19 = vector.shape_cast %18 : vector<1x1x128xf32> to vector<1x128xf32>
    %20 = vector.broadcast %19 : vector<1x128xf32> to vector<8x128xf32>
    %21 = arith.addf %17, %20 : vector<8x128xf32>
    %cst_19 = arith.constant 0.000000e+00 : f32
    %22 = vector.broadcast %cst_19 : f32 to vector<8x128xf32>
    %23 = arith.maximumf %21, %22 : vector<8x128xf32>
    %c2 = arith.constant 2 : index
    %c0_20 = arith.constant 0 : index
    %c0_21 = arith.constant 0 : index
    %24 = vector.load %arg3[%c2, %c0_20, %c0_21] : memref<3x128x128xf32, #tpu.memory_space<vmem>>, vector<1x128x128xf32>
    %25 = vector.shape_cast %24 : vector<1x128x128xf32> to vector<128x128xf32>
    %cst_22 = arith.constant dense<0.000000e+00> : vector<8x128xf32>
    %26 = tpu.matmul %23, %25, %cst_22 {dimension_numbers = #tpu.dot_dimension_numbers<[1], [0], [0], [1], [0, 0, 1, 1], [], []>} : vector<8x128xf32>, vector<128x128xf32>, vector<8x128xf32> -> vector<8x128xf32>
    %c2_23 = arith.constant 2 : index
    %c0_24 = arith.constant 0 : index
    %c0_25 = arith.constant 0 : index
    %27 = vector.load %arg4[%c2_23, %c0_24, %c0_25] : memref<3x1x128xf32, #tpu.memory_space<vmem>>, vector<1x1x128xf32>
    %28 = vector.shape_cast %27 : vector<1x1x128xf32> to vector<1x128xf32>
    %29 = vector.broadcast %28 : vector<1x128xf32> to vector<8x128xf32>
    %30 = arith.addf %26, %29 : vector<8x128xf32>
    %cst_26 = arith.constant 0.000000e+00 : f32
    %31 = vector.broadcast %cst_26 : f32 to vector<8x128xf32>
    %32 = arith.maximumf %30, %31 : vector<8x128xf32>
    %c0_27 = arith.constant 0 : index
    %c0_28 = arith.constant 0 : index
    %33 = vector.load %arg5[%c0_27, %c0_28] : memref<128x128xf32, #tpu.memory_space<vmem>>, vector<128x128xf32>
    %cst_29 = arith.constant dense<0.000000e+00> : vector<8x128xf32>
    %34 = tpu.matmul %32, %33, %cst_29 {dimension_numbers = #tpu.dot_dimension_numbers<[1], [0], [0], [1], [0, 0, 1, 1], [], []>} : vector<8x128xf32>, vector<128x128xf32>, vector<8x128xf32> -> vector<8x128xf32>
    %c0_30 = arith.constant 0 : index
    %c0_31 = arith.constant 0 : index
    %35 = vector.load %arg6[%c0_30, %c0_31] : memref<1x128xf32, #tpu.memory_space<vmem>>, vector<1x128xf32>
    %36 = vector.broadcast %35 : vector<1x128xf32> to vector<8x128xf32>
    %37 = arith.addf %34, %36 : vector<8x128xf32>
    %c0_32 = arith.constant 0 : index
    %c0_33 = arith.constant 0 : index
    %38 = vector.load %arg7[%c0_32, %c0_33] : memref<8x128xf32, #tpu.memory_space<vmem>>, vector<8x128xf32>
    tpu.vector_store %arg7[%c0_32, %c0_33], %37 {strides = array<i32>} : memref<8x128xf32, #tpu.memory_space<vmem>>, vector<8x128xf32>,
    return
  }
}

</mosaic_0001>

<bundles_post_ra>
// kernel: model_normal_forward.1
= control target key start
LH: loop header
LB: loop body
LE: loop exit
PB: predicated region body
PF: predicated region fallthrough
CT: control target
= control target key end

     0   :  { %12 = vsyncpa [#allocation3], 0  ;;  %s1208_s0 = inlined_call_operand.vmem [shape: f32[8,32], index: 0, kind: input, shape index: {}]   ;;  %s1209_s1 = inlined_call_operand.hbm [shape: f32[32,128], index: 1, kind: input, shape index: {}]   ;;  %s1210_s2 = inlined_call_operand.vmem [shape: f32[1,128], index: 2, kind: input, shape index: {}]   ;;  %s1211_s3 = inlined_call_operand.hbm [shape: f32[3,128,128], index: 3, kind: input, shape index: {}]   ;;  %s1212_s4 = inlined_call_operand.hbm [shape: f32[3,1,128], index: 4, kind: input, shape index: {}]   ;;  %s1213_s5 = inlined_call_operand.hbm [shape: f32[128,128], index: 5, kind: input, shape index: {}]   ;;  %s1214_s6 = inlined_call_operand.vmem [shape: f32[1,128], index: 6, kind: input, shape index: {}]   ;;  %s1215_s7 = inlined_call_operand.hbm [shape: f32[8,128], index: 7, kind: output, shape index: {}]  }
   0x1   :  { %13 = vsyncpa [#allocation6], 0 }
   0x2   :  { %14 = vsyncpa [#allocation9], 0 }
   0x3   :  { %15 = vsyncpa [#allocation4], 0  ;;  %s1027_s24 = smov [#allocation5]   ;;  %s1028_s26 = smov [#allocation2]  }
   0x4   :  { %s37_s25 = sshll.u32 %s1027_s24, 4  ;;  %s23_s27 = sshll.u32 %s1028_s26, 4  ;;  %s38_s25 = int_to_ptr.vmem [resolvable:$true] %s37_s25  ;;  %s1079_s27 = int_to_ptr.vmem [resolvable:$true] %s23_s27 }
   0x5   :  { %s909_s30 = scalar_lea.hbm %s1211_s3, 6144 }
   0x6   :  { %p910_p0 = scmp.ne.s32.totalorder %s1211_s3, %s909_s30  ;;  %p913_p1 = scmp.lt.u32.totalorder %s909_s30, %s1211_s3 }
   0x8   :  { %p915_p2 = pnand %p913_p1, %p910_p0 }
   0xa   :  { %918 = shalt.err (!%p915_p2)
}
   0xb   :  { %s919_s12 = scalar_lea.vmem %s38_s25, 6144  ;;  %p924_p4 = scmp.lt.s32.totalorder %s38_s25, %s38_s25 }
   0xc   :  { %p920_p3 = scmp.ne.s32.totalorder %s38_s25, %s919_s12  ;;  %p925_p5 = scmp.lt.s32.totalorder %s919_s12, %s919_s12 }
   0xe   :  { %p926_p6 = por %p925_p5, %p924_p4 }
  0x10   :  { %p927_p7 = pnand %p926_p6, %p920_p3 }
  0x12   :  { %930 = shalt.err (!%p927_p7)
}
  0x13   :  { %s1029_s13 = smov 128   ;;  %s1030_s14 = smov 8  }
  0x14   :  { %43 = dma.hbm_to_vmem [thread:$0]  %s1211_s3, 6144, %s38_s25, [#allocation6], %s1029_s13, %s1029_s13, %s1030_s14  }
  0x15   :  { %s931_s19 = scalar_lea.hbm %s1209_s1, 512 }
  0x16   :  { %p932_p8 = scmp.ne.s32.totalorder %s1209_s1, %s931_s19  ;;  %p935_p9 = scmp.lt.u32.totalorder %s931_s19, %s1209_s1 }
  0x18   :  { %p937_p10 = pnand %p935_p9, %p932_p8 }
  0x1a   :  { %940 = shalt.err (!%p937_p10)
}
  0x1b   :  { %s941_s24 = scalar_lea.vmem %s1079_s27, 512  ;;  %p946_p12 = scmp.lt.s32.totalorder %s1079_s27, %s1079_s27 }
  0x1c   :  { %p942_p11 = scmp.ne.s32.totalorder %s1079_s27, %s941_s24  ;;  %p947_p13 = scmp.lt.s32.totalorder %s941_s24, %s941_s24 }
  0x1e   :  { %p948_p0 = por %p947_p13, %p946_p12 }
  0x20   :  { %p949_p1 = pnand %p948_p0, %p942_p11 }
  0x22   :  { %952 = shalt.err (!%p949_p1)
}
  0x23   :  { %29 = dma.hbm_to_vmem [thread:$0]  %s1209_s1, 512, %s1079_s27, [#allocation3], %s1029_s13, %s1029_s13, %s1030_s14  }
  0x24   :  { %s1031_s26 = smov [#allocation7]   ;;  %s953_s8 = scalar_lea.hbm %s1212_s4, 48 }
  0x25   :  { %s49_s28 = sshll.u32 %s1031_s26, 4  ;;  %p954_p2 = scmp.ne.s32.totalorder %s1212_s4, %s953_s8  ;;  %s50_s28 = int_to_ptr.vmem [resolvable:$true] %s49_s28 }
  0x26   :  { %p957_p3 = scmp.lt.u32.totalorder %s953_s8, %s1212_s4 }
  0x28   :  { %p959_p4 = pnand %p957_p3, %p954_p2 }
  0x2a   :  { %962 = shalt.err (!%p959_p4)
}
  0x2b   :  { %s963_s15 = scalar_lea.vmem %s50_s28, 48  ;;  %s967_s1 = scalar_lea.vmem %s50_s28, 64 }
  0x2c   :  { %p964_p5 = scmp.ne.s32.totalorder %s50_s28, %s963_s15  ;;  %p968_p6 = scmp.lt.s32.totalorder %s50_s28, %s50_s28 }
  0x2d   :  { %p969_p7 = scmp.lt.s32.totalorder %s967_s1, %s963_s15 }
  0x2f   :  { %p970_p8 = por %p969_p7, %p968_p6 }
  0x31   :  { %p971_p9 = pnand %p970_p8, %p964_p5 }
  0x33   :  { %974 = shalt.err (!%p971_p9)
}
  0x34   :  { %s1032_s27 = smov 16   ;;  %s1033_s16 = smov 1  }
  0x35   :  { %55 = dma.hbm_to_vmem [thread:$0]  %s1212_s4, 48, %s50_s28, [#allocation6], %s1032_s27, %s1032_s27, %s1033_s16  }
  0x36   :  { %s1034_s19 = smov [#allocation8]   ;;  %s975_s23 = scalar_lea.hbm %s1213_s5, 2048 }
  0x37   :  { %s61_s20 = sshll.u32 %s1034_s19, 4  ;;  %p976_p10 = scmp.ne.s32.totalorder %s1213_s5, %s975_s23  ;;  %s62_s20 = int_to_ptr.vmem [resolvable:$true] %s61_s20 }
  0x38   :  { %p979_p11 = scmp.lt.u32.totalorder %s975_s23, %s1213_s5 }
  0x3a   :  { %p981_p12 = pnand %p979_p11, %p976_p10 }
  0x3c   :  { %984 = shalt.err (!%p981_p12)
}
  0x3d   :  { %s985_s29 = scalar_lea.vmem %s62_s20, 2048  ;;  %p990_p0 = scmp.lt.s32.totalorder %s62_s20, %s62_s20 }
  0x3e   :  { %p986_p13 = scmp.ne.s32.totalorder %s62_s20, %s985_s29  ;;  %p991_p1 = scmp.lt.s32.totalorder %s985_s29, %s985_s29 }
  0x40   :  { %p992_p2 = por %p991_p1, %p990_p0 }
  0x42   :  { %p993_p3 = pnand %p992_p2, %p986_p13 }
  0x44   :  { %996 = shalt.err (!%p993_p3)
}
  0x45   :  { %67 = dma.hbm_to_vmem [thread:$0]  %s1213_s5, 2048, %s62_s20, [#allocation9], %s1029_s13, %s1029_s13, %s1030_s14  }
  0x46   :  { %1019 = dma.done.wait [#allocation3], 512  }
  0x47   :  { %1020 = vsyncadd [#allocation3], 4294966784 }
  0x48   :  { %1021 = dma.done.wait [#allocation6], 6192  }
  0x49   :  { %1022 = vsyncadd [#allocation6], 4294961104 }
  0x4a   :  { %1023 = dma.done.wait [#allocation9], 2048  }
  0x4b   :  { %1024 = vsyncadd [#allocation9], 4294965248  ;;  %v1035_v0 = vmov 0.0|0.0   ;;  %vm1036_vm0 = vmmov 0   ;;  %v1037_v1 = vmov 0.0   ;;  %v83_v2 = vld [vmem:[#allocation2] sm:$0xff] }
  0x4c   :  { %795 = vmatprep.subr.bf16.mxu0 %v1035_v0  ;;  %652 = vmatprep.mubr.msk.f32.mxu0 %vm1036_vm0, %v1037_v1  ;;  %v84_v3 = vld [vmem:[#allocation2 + $0x8] sm:$0xff]  ;;  %v85_v4 = vld [vmem:[#allocation2 + $0x10] sm:$0xff]  ;;  %v86_v6 = vld [vmem:[#allocation2 + $0x18] sm:$0xff]  ;;  %vm94_vm1 = vcmask 261120   ;;  %s1038_s8 = smov [#allocation10]  }
  0x4d   :  { %801 = vmatprep.subr.bf16.mxu1 %v1035_v0  ;;  %687 = vmatprep.mubr.msk.f32.mxu1 %vm1036_vm0, %v1037_v1  ;;  %v796_v5 = vpack.c.bf16 %v84_v3, %v83_v2  ;;  %v168_v7 = vld [vmem:[#allocation5] sm:$0xff]  ;;  %v169_v8 = vld [vmem:[#allocation5 + $0x8] sm:$0xff]  ;;  %v170_v9 = vld [vmem:[#allocation5 + $0x10] sm:$0xff]  ;;  %v799_v11 = vpack.c.bf16 %v86_v6, %v85_v4  ;;  %s554_s9 = sshll.u32 %s1038_s8, 4  ;;  %s555_s9 = int_to_ptr.vmem [resolvable:$true] %s554_s9 }
  0x4e   :  { %v171_v10 = vld [vmem:[#allocation5 + $0x18] sm:$0xff]  ;;  %v802_v12 = vpack.c.bf16 %v169_v8, %v168_v7  ;;  %v172_v14 = vld [vmem:[#allocation5 + $0x20] sm:$0xff]  ;;  %v173_v15 = vld [vmem:[#allocation5 + $0x28] sm:$0xff]  ;;  %s997_s10 = scalar_lea.vmem %s555_s9, 128  ;;  %p1002_p5 = scmp.lt.s32.totalorder %s555_s9, %s555_s9 }
  0x4f   :  { %797 = vmatpush3.bf16.msra.mxu0 %v796_v5  ;;  %v805_v13 = vpack.c.bf16 %v171_v10, %v170_v9  ;;  %v82_v16 = vld [vmem:[%s1208_s0] sm:$0xff]  ;;  %v808_v17 = vpack.c.bf16 %v173_v15, %v172_v14  ;;  %v174_v18 = vld [vmem:[#allocation5 + $0x30] sm:$0xff]  ;;  %v176_v21 = vld [vmem:[#allocation5 + $0x40] sm:$0xff]  ;;  %p998_p4 = scmp.ne.s32.totalorder %s555_s9, %s997_s10  ;;  %p1003_p6 = scmp.lt.s32.totalorder %s997_s10, %s997_s10 }
  0x50   :  { %798 = vmatprep.subr.bf16.mxu0 %v1035_v0  ;;  %803 = vmatpush3.bf16.msra.mxu1 %v802_v12  ;;  %v175_v19 = vld [vmem:[#allocation5 + $0x38] sm:$0xff]  ;;  %v177_v22 = vld [vmem:[#allocation5 + $0x48] sm:$0xff]  ;;  %v178_v24 = vld [vmem:[#allocation5 + $0x50] sm:$0xff] }
  0x51   :  { %804 = vmatprep.subr.bf16.mxu1 %v1035_v0  ;;  %v811_v20 = vpack.c.bf16 %v175_v19, %v174_v18  ;;  %v814_v23 = vpack.c.bf16 %v177_v22, %v176_v21  ;;  %v179_v25 = vld [vmem:[#allocation5 + $0x58] sm:$0xff]  ;;  %v180_v27 = vld [vmem:[#allocation5 + $0x60] sm:$0xff]  ;;  %v181_v28 = vld [vmem:[#allocation5 + $0x68] sm:$0xff]  ;;  %p1004_p7 = por %p1003_p6, %p1002_p5 }
  0x52   :  { %v817_v26 = vpack.c.bf16 %v179_v25, %v178_v24  ;;  %v820_v29 = vpack.c.bf16 %v181_v28, %v180_v27  ;;  %v182_v30 = vld [vmem:[#allocation5 + $0x70] sm:$0xff]  ;;  %v183_v31 = vld [vmem:[#allocation5 + $0x78] sm:$0xff]  ;;  %v263_v33 = vld [vmem:[#allocation5 + $0x80] sm:$0xff] }
  0x53   :  { %800 = vmatpush3.bf16.msra.mxu0 %v799_v11  ;;  %v823_v32 = vpack.c.bf16 %v183_v31, %v182_v30  ;;  %v264_v34 = vld [vmem:[#allocation5 + $0x88] sm:$0xff]  ;;  %v265_v35 = vld [vmem:[#allocation5 + $0x90] sm:$0xff]  ;;  %v266_v37 = vld [vmem:[#allocation5 + $0x98] sm:$0xff]  ;;  %p1005_p8 = pnand %p1004_p7, %p998_p4 }
  0x54   :  { %825 = vmatprep.subr.bf16.mxu0 %v1035_v0  ;;  %806 = vmatpush3.bf16.msra.mxu1 %v805_v13  ;;  %v826_v36 = vpack.c.bf16 %v264_v34, %v263_v33  ;;  %v829_v38 = vpack.c.bf16 %v266_v37, %v265_v35  ;;  %v267_v39 = vld [vmem:[#allocation5 + $0xa0] sm:$0xff]  ;;  %v268_v40 = vld [vmem:[#allocation5 + $0xa8] sm:$0xff]  ;;  %v269_v42 = vld [vmem:[#allocation5 + $0xb0] sm:$0xff] }
  0x55   :  { %807 = vmatprep.subr.bf16.mxu1 %v1035_v0  ;;  %v832_v41 = vpack.c.bf16 %v268_v40, %v267_v39  ;;  %v270_v43 = vld [vmem:[#allocation5 + $0xb8] sm:$0xff]  ;;  %v271_v45 = vld [vmem:[#allocation5 + $0xc0] sm:$0xff]  ;;  %v272_v46 = vld [vmem:[#allocation5 + $0xc8] sm:$0xff] }
  0x56   :  { %653 = vmatmul.mubr.msk.f32.vlgmr.msra.gmra.mrb[0].mxu0 %vm94_vm1, %v82_v16  ;;  %v835_v44 = vpack.c.bf16 %v270_v43, %v269_v42  ;;  %v838_v47 = vpack.c.bf16 %v272_v46, %v271_v45  ;;  %v273_v48 = vld [vmem:[#allocation5 + $0xd0] sm:$0xff]  ;;  %v274_v49 = vld [vmem:[#allocation5 + $0xd8] sm:$0xff]  ;;  %v275_v51 = vld [vmem:[#allocation5 + $0xe0] sm:$0xff] }
  0x57   :  { %722 = vmatprep.mubr.msk.f32.mxu0 %vm1036_vm0, %v1037_v1  ;;  %827 = vmatpush3.bf16.msra.mxu0 %v826_v36  ;;  %v841_v50 = vpack.c.bf16 %v274_v49, %v273_v48  ;;  %v276_v52 = vld [vmem:[#allocation5 + $0xe8] sm:$0xff]  ;;  %v565_v54 = vld [vmem:[%s1210_s2] ss:$0 sm:$0xff]  ;;  %v277_v58 = vld [vmem:[#allocation5 + $0xf0] sm:$0xff] }
  0x58   :  { %809 = vmatpush3.bf16.msra.mxu1 %v808_v17  ;;  %828 = vmatprep.subr.bf16.mxu0 %v1035_v0  ;;  %v844_v53 = vpack.c.bf16 %v276_v52, %v275_v51  ;;  %v278_v59 = vld [vmem:[#allocation5 + $0xf8] sm:$0xff]  ;;  %v359_v61 = vld [vmem:[#allocation5 + $0x100] sm:$0xff]  ;;  %v360_v62 = vld [vmem:[#allocation5 + $0x108] sm:$0xff] }
  0x59   :  { %810 = vmatprep.subr.bf16.mxu1 %v1035_v0  ;;  %v847_v60 = vpack.c.bf16 %v278_v59, %v277_v58  ;;  %v361_v63 = vld [vmem:[#allocation5 + $0x110] sm:$0xff]  ;;  %v850_v2 = vpack.c.bf16 %v360_v62, %v359_v61  ;;  %v362_v3 = vld [vmem:[#allocation5 + $0x118] sm:$0xff]  ;;  %v363_v5 = vld [vmem:[#allocation5 + $0x120] sm:$0xff] }
  0x5a   :  { %v853_v4 = vpack.c.bf16 %v362_v3, %v361_v63  ;;  %v364_v6 = vld [vmem:[#allocation5 + $0x128] sm:$0xff]  ;;  %v365_v8 = vld [vmem:[#allocation5 + $0x130] sm:$0xff]  ;;  %v366_v9 = vld [vmem:[#allocation5 + $0x138] sm:$0xff] }
  0x5b   :  { %830 = vmatpush3.bf16.msra.mxu0 %v829_v38  ;;  %v856_v7 = vpack.c.bf16 %v364_v6, %v363_v5  ;;  %v859_v10 = vpack.c.bf16 %v366_v9, %v365_v8  ;;  %v367_v11 = vld [vmem:[#allocation5 + $0x140] sm:$0xff]  ;;  %v368_v12 = vld [vmem:[#allocation5 + $0x148] sm:$0xff]  ;;  %v369_v14 = vld [vmem:[#allocation5 + $0x150] sm:$0xff] }
  0x5c   :  { %812 = vmatpush3.bf16.msra.mxu1 %v811_v20  ;;  %831 = vmatprep.subr.bf16.mxu0 %v1035_v0  ;;  %v862_v13 = vpack.c.bf16 %v368_v12, %v367_v11  ;;  %v370_v15 = vld [vmem:[#allocation5 + $0x158] sm:$0xff]  ;;  %v371_v17 = vld [vmem:[#allocation5 + $0x160] sm:$0xff]  ;;  %v372_v18 = vld [vmem:[#allocation5 + $0x168] sm:$0xff] }
  0x5d   :  { %813 = vmatprep.subr.bf16.mxu1 %v1035_v0  ;;  %v865_v16 = vpack.c.bf16 %v370_v15, %v369_v14  ;;  %v868_v19 = vpack.c.bf16 %v372_v18, %v371_v17  ;;  %v567_v20 = vld [vmem:[#allocation7] ss:$0 sm:$0xff]  ;;  %v373_v25 = vld [vmem:[#allocation5 + $0x170] sm:$0xff]  ;;  %v454_v28 = vld [vmem:[#allocation8] sm:$0xff] }
  0x5e   :  { %v456_v30 = vld [vmem:[#allocation8 + $0x10] sm:$0xff]  ;;  %v458_v34 = vld [vmem:[#allocation8 + $0x20] sm:$0xff]  ;;  %v459_v35 = vld [vmem:[#allocation8 + $0x28] sm:$0xff] }
  0x5f   :  { %833 = vmatpush3.bf16.msra.mxu0 %v832_v41  ;;  %v880_v36 = vpack.c.bf16 %v459_v35, %v458_v34  ;;  %v461_v37 = vld [vmem:[#allocation8 + $0x38] sm:$0xff]  ;;  %v462_v39 = vld [vmem:[#allocation8 + $0x40] sm:$0xff]  ;;  %v463_v40 = vld [vmem:[#allocation8 + $0x48] sm:$0xff] }
  0x60   :  { %815 = vmatpush3.bf16.msra.mxu1 %v814_v23  ;;  %834 = vmatprep.subr.bf16.mxu0 %v1035_v0  ;;  %v886_v41 = vpack.c.bf16 %v463_v40, %v462_v39  ;;  %v464_v42 = vld [vmem:[#allocation8 + $0x50] sm:$0xff]  ;;  %v465_v43 = vld [vmem:[#allocation8 + $0x58] sm:$0xff]  ;;  %v466_v45 = vld [vmem:[#allocation8 + $0x60] sm:$0xff] }
  0x61   :  { %816 = vmatprep.subr.bf16.mxu1 %v1035_v0  ;;  %v467_v46 = vld [vmem:[#allocation8 + $0x68] sm:$0xff]  ;;  %v568_v48 = vld [vmem:[#allocation7 + $0x1] ss:$0 sm:$0xff] }
  0x63   :  { %836 = vmatpush3.bf16.msra.mxu0 %v835_v44  ;;  %v889_v44 = vpack.c.bf16 %v465_v43, %v464_v42 }
  0x64   :  { %818 = vmatpush3.bf16.msra.mxu1 %v817_v26  ;;  %837 = vmatprep.subr.bf16.mxu0 %v1035_v0  ;;  %v374_v26 = vld [vmem:[#allocation5 + $0x178] sm:$0xff] }
  0x65   :  { %819 = vmatprep.subr.bf16.mxu1 %v1035_v0  ;;  %v871_v27 = vpack.c.bf16 %v374_v26, %v373_v25 }
  0x67   :  { %839 = vmatpush3.bf16.msra.mxu0 %v838_v47  ;;  %v892_v47 = vpack.c.bf16 %v467_v46, %v466_v45 }
  0x68   :  { %821 = vmatpush3.bf16.msra.mxu1 %v820_v29  ;;  %840 = vmatprep.subr.bf16.mxu0 %v1035_v0  ;;  %v455_v29 = vld [vmem:[#allocation8 + $0x8] sm:$0xff] }
  0x69   :  { %822 = vmatprep.subr.bf16.mxu1 %v1035_v0  ;;  %v874_v31 = vpack.c.bf16 %v455_v29, %v454_v28 }
  0x6b   :  { %842 = vmatpush3.bf16.msra.mxu0 %v841_v50 }
  0x6c   :  { %824 = vmatpush3.bf16.msra.mxu1 %v823_v32  ;;  %843 = vmatprep.subr.bf16.mxu0 %v1035_v0  ;;  %v457_v32 = vld [vmem:[#allocation8 + $0x18] sm:$0xff] }
  0x6d   :  { %849 = vmatprep.subr.bf16.mxu1 %v1035_v0  ;;  %v877_v33 = vpack.c.bf16 %v457_v32, %v456_v30 }
  0x6f   :  { %845 = vmatpush3.bf16.msra.mxu0 %v844_v53  ;;  %v468_v53 = vld [vmem:[#allocation8 + $0x70] sm:$0xff] }
  0x70   :  { %846 = vmatprep.subr.bf16.mxu0 %v1035_v0 }
  0x73   :  { %848 = vmatpush3.bf16.msra.mxu0 %v847_v60 }
  0x74   :  { %873 = vmatprep.subr.bf16.mxu0 %v1035_v0 }
 0x129   :  { %v164_v55 = vpop.f32.mrb[0].mxu0 }
 0x12a   :  { %v165_v56 = vadd.f32 %v565_v54, %v164_v55  ;;  %v654_v57 = vpop.f32.mrb[1].mxu0  ;;  %v469_v54 = vld [vmem:[#allocation8 + $0x78] sm:$0xff] }
 0x12b   :  { %v895_v55 = vpack.c.bf16 %v469_v54, %v468_v53 }
 0x12c   :  { %688 = vmatmul.mubr.f32.vlgmr.msra.gmra.mrb[0].mxu1 %v165_v56  ;;  %v569_v56 = vld [vmem:[#allocation7 + $0x2] ss:$0 sm:$0xff] }
 0x12d   :  { %757 = vmatprep.mubr.msk.f32.mxu1 %vm1036_vm0, %v1037_v1  ;;  %851 = vmatpush3.bf16.msra.mxu1 %v850_v2 }
 0x12e   :  { %852 = vmatprep.subr.bf16.mxu1 %v1035_v0 }
 0x131   :  { %854 = vmatpush3.bf16.msra.mxu1 %v853_v4 }
 0x132   :  { %855 = vmatprep.subr.bf16.mxu1 %v1035_v0 }
 0x135   :  { %857 = vmatpush3.bf16.msra.mxu1 %v856_v7 }
 0x136   :  { %858 = vmatprep.subr.bf16.mxu1 %v1035_v0 }
 0x139   :  { %860 = vmatpush3.bf16.msra.mxu1 %v859_v10 }
 0x13a   :  { %861 = vmatprep.subr.bf16.mxu1 %v1035_v0 }
 0x13d   :  { %863 = vmatpush3.bf16.msra.mxu1 %v862_v13 }
 0x13e   :  { %864 = vmatprep.subr.bf16.mxu1 %v1035_v0 }
 0x141   :  { %866 = vmatpush3.bf16.msra.mxu1 %v865_v16 }
 0x142   :  { %867 = vmatprep.subr.bf16.mxu1 %v1035_v0 }
 0x145   :  { %869 = vmatpush3.bf16.msra.mxu1 %v868_v19 }
 0x146   :  { %870 = vmatprep.subr.bf16.mxu1 %v1035_v0 }
 0x149   :  { %872 = vmatpush3.bf16.msra.mxu1 %v871_v27 }
 0x1ff   :  { %v257_v21 = vpop.f32.mrb[0].mxu1 }
 0x200   :  { %v258_v22 = vadd.f32 %v567_v20, %v257_v21  ;;  %v689_v23 = vpop.f32.mrb[1].mxu1 }
 0x202   :  { %v261_v24 = vmax.f32 %v258_v22, 0.0 }
 0x204   :  { %723 = vmatmul.mubr.f32.vlgmr.msra.gmra.mrb[2].mxu0 %v261_v24 }
 0x205   :  { %792 = vmatprep.mubr.msk.f32.mxu0 %vm1036_vm0, %v1037_v1  ;;  %875 = vmatpush3.bf16.msra.mxu0 %v874_v31  ;;  %v460_v1 = vld [vmem:[#allocation8 + $0x30] sm:$0xff] }
 0x206   :  { %876 = vmatprep.subr.bf16.mxu0 %v1035_v0  ;;  %v883_v38 = vpack.c.bf16 %v461_v37, %v460_v1 }
 0x209   :  { %878 = vmatpush3.bf16.msra.mxu0 %v877_v33 }
 0x20a   :  { %879 = vmatprep.subr.bf16.mxu0 %v1035_v0 }
 0x20d   :  { %881 = vmatpush3.bf16.msra.mxu0 %v880_v36 }
 0x20e   :  { %882 = vmatprep.subr.bf16.mxu0 %v1035_v0 }
 0x211   :  { %884 = vmatpush3.bf16.msra.mxu0 %v883_v38 }
 0x212   :  { %885 = vmatprep.subr.bf16.mxu0 %v1035_v0 }
 0x215   :  { %887 = vmatpush3.bf16.msra.mxu0 %v886_v41 }
 0x216   :  { %888 = vmatprep.subr.bf16.mxu0 %v1035_v0 }
 0x219   :  { %890 = vmatpush3.bf16.msra.mxu0 %v889_v44 }
 0x21a   :  { %891 = vmatprep.subr.bf16.mxu0 %v1035_v0 }
 0x21d   :  { %893 = vmatpush3.bf16.msra.mxu0 %v892_v47 }
 0x21e   :  { %894 = vmatprep.subr.bf16.mxu0 %v1035_v0  ;;  %v570_v0 = vld [vmem:[%s1214_s6] ss:$0 sm:$0xff] }
 0x221   :  { %896 = vmatpush3.bf16.msra.mxu0 %v895_v55 }
 0x2d7   :  { %v353_v49 = vpop.f32.mrb[2].mxu0 }
 0x2d8   :  { %v354_v50 = vadd.f32 %v568_v48, %v353_v49  ;;  %v724_v51 = vpop.f32.mrb[3].mxu0 }
 0x2da   :  { %v357_v52 = vmax.f32 %v354_v50, 0.0 }
 0x2dc   :  { %758 = vmatmul.mubr.f32.vlgmr.msra.gmra.mrb[2].mxu1 %v357_v52 }
 0x3af   :  { %v449_v57 = vpop.f32.mrb[2].mxu1 }
 0x3b0   :  { %v450_v58 = vadd.f32 %v569_v56, %v449_v57  ;;  %v759_v59 = vpop.f32.mrb[3].mxu1 }
 0x3b2   :  { %v453_v60 = vmax.f32 %v450_v58, 0.0 }
 0x3b4   :  { %793 = vmatmul.mubr.f32.vlgmr.msra.gmra.mrb[4].mxu0 %v453_v60 }
 0x487   :  { %v543_v61 = vpop.f32.mrb[4].mxu0 }
 0x488   :  { %v544_v62 = vadd.f32 %v570_v0, %v543_v61  ;;  %v794_v63 = vpop.f32.mrb[5].mxu0 }
 0x48a   :  { %547 = vst [vmem:[#allocation10] sm:$0xff] %v544_v62 }
 0x48b   :  { %1008 = shalt.err (!%p1005_p8)
}
 0x48c   :  { %s1009_s15 = scalar_lea.hbm %s1215_s7, 128 }
 0x48d   :  { %p1010_p9 = scmp.ne.s32.totalorder %s1215_s7, %s1009_s15  ;;  %p1013_p10 = scmp.lt.u32.totalorder %s1009_s15, %s1215_s7 }
 0x48f   :  { %p1015_p11 = pnand %p1013_p10, %p1010_p9 }
 0x491   :  { %1018 = shalt.err (!%p1015_p11)
}
 0x492   :  { %557 = dma.vmem_to_hbm [thread:$0]  %s555_s9, 128, %s1215_s7, [#allocation4]  }
 0x493   :  { %1025 = dma.done.wait [#allocation4], 128  }
 0x494   :  { %1026 = vsyncadd [#allocation4], 4294967168 }
 0x495   :  { %561 = vsyncpa [#allocation3], 1 }
 0x496   :  { %562 = vsyncpa [#allocation6], 1 }
 0x497   :  { %563 = vsyncpa [#allocation9], 1 }
 0x498   :  { %564 = vsyncpa [#allocation4], 1 }

</bundles_post_ra>
